<compile_context>
chip_gen: v7x
topology: tpu7x:2x2x1
jax: 0.10.0
libtpu: 0.0.40
codegen_flags: <defaults>
</compile_context>

<pallas_src>
import functools

import jax
import jax.numpy as jnp
from jax.experimental import pallas as pl
from jax.experimental.pallas import tpu as pltpu


_LN_EPS = 1e-6  # Position_wise_FFN uses eps=1e-6; Multi_Head's LN assumed identical.
                # (PyTorch nn.LayerNorm default is 1e-5 -- adjust if the reference differs.)


def _derive_vmem_limit():
    """Scoped-VMEM limit derived from the chip (~3/4 of capacity, capped)."""
    default = 48 * 1024 * 1024  # safe on v5e/v6e/v7x
    try:
        info = pltpu.get_tpu_info()
        cap = getattr(info, "vmem_capacity_bytes", None)
        if not cap:
            return default
        return min(int(cap) * 3 // 4, 100 * 1024 * 1024)
    except Exception:
        return default


_VMEM_LIMIT_BYTES = _derive_vmem_limit()
_BIG_VMEM = _VMEM_LIMIT_BYTES >= 80 * 1024 * 1024      # v5e / v6e (128 MiB VMEM)
_ROW_TARGET = 512 if _BIG_VMEM else 256                # M-tile for row kernels
_COL_TARGET = 1024 if _BIG_VMEM else 512               # d_ff tile for the FFN
_QT_TARGET = 256                                       # query tile for attention


def _compiler_params(dimension_semantics):
    return pltpu.CompilerParams(dimension_semantics=dimension_semantics,
                                vmem_limit_bytes=_VMEM_LIMIT_BYTES)


def _row_tile(m, target):
    """Largest row tile <= target dividing m (prefer multiples of 8)."""
    if m <= target:
        return m
    for t in range(target, 7, -8):
        if m % t == 0:
            return t
    return target  # ragged tail handled by pl.cdiv grid (rows are independent)


def _col_tile(d, target):
    """d_ff tile: multiple of 128 dividing d, else the full dimension."""
    if d <= target:
        return d
    for t in range(target, 127, -128):
        if d % t == 0:
            return t
    return d


# ----------------------------- Pallas kernels ------------------------------ #

def _qkv_proj_kernel(x_ref, w_ref, b_ref, q_ref, kv_ref, *, emb, scale):
    # Fused Q/K/V projection:  y = x @ W_qkv + b_qkv   (bf16 operands, f32 acc)
    # The softmax scale 1/sqrt(dk) is folded into Q here (cheap, hidden by MXU).
    y = jnp.dot(x_ref[...].astype(jnp.bfloat16), w_ref[...],
                preferred_element_type=jnp.float32)
    y = y + b_ref[...]
    q_ref[...] = (y[:, :emb] * scale).astype(q_ref.dtype)     # pre-scaled Q (bf16)
    kv_ref[...] = y[:, emb:].astype(kv_ref.dtype)             # K|V slab (bf16)


def qkv_projection(x, w_bf16, b, *, scale, tile_m):
    M, E = x.shape
    N = w_bf16.shape[1]  # 3E
    kernel = functools.partial(_qkv_proj_kernel, emb=E, scale=scale)
    return pl.pallas_call(
        kernel,
        out_shape=(jax.ShapeDtypeStruct((M, E), jnp.bfloat16),
                   jax.ShapeDtypeStruct((M, 2 * E), jnp.bfloat16)),
        grid=(pl.cdiv(M, tile_m),),
        in_specs=[
            pl.BlockSpec((tile_m, E), lambda i: (i, 0)),
            pl.BlockSpec((E, N), lambda i: (0, 0)),   # bf16 weight resident over M tiles
            pl.BlockSpec((1, N), lambda i: (0, 0)),   # f32 bias
        ],
        out_specs=(pl.BlockSpec((tile_m, E), lambda i: (i, 0)),
                   pl.BlockSpec((tile_m, 2 * E), lambda i: (i, 0))),
        compiler_params=_compiler_params(("parallel",)),
    )(x, w_bf16, b.reshape(1, N))


def _attn_kernel(mask_ref, q_ref, kv_ref, ctx_ref, *maybe_att_ref, num_heads):
    # One (batch, query-tile) per grid step; all heads handled inside.
    E = q_ref.shape[2]
    dk = E // num_heads

    q = q_ref[0]                                   # (tq, E)  bf16, pre-scaled
    kv = kv_ref[0]                                 # (S, 2E)  bf16
    # int8 mask -> additive f32 bias (computed once per tile, not per head)
    bias = jnp.where(mask_ref[0].astype(jnp.float32) != 0,
                     jnp.float32(0.0), jnp.float32(-1e9))      # (tq, S)

    ctx_parts = []
    for h in range(num_heads):                     # static unroll over heads
        qh = q[:, h * dk:(h + 1) * dk]                         # (tq, dk) bf16
        kh = kv[:, h * dk:(h + 1) * dk]                        # (S, dk)  bf16
        vh = kv[:, E + h * dk:E + (h + 1) * dk]                # (S, dk)  bf16

        # contract last dim of both operands -> no K transpose (no XLU relayout)
        s = jax.lax.dot_general(qh, kh, (((1,), (1,)), ((), ())),
                                preferred_element_type=jnp.float32)   # (tq, S) f32
        s = s + bias
        s = s - jnp.max(s, axis=-1, keepdims=True)
        p = jnp.exp(s)
        p = p * pl.reciprocal(jnp.sum(p, axis=-1, keepdims=True), approx=True)

        if maybe_att_ref:
            maybe_att_ref[0][0, h] = p.astype(maybe_att_ref[0].dtype)

        ctx_parts.append(
            jnp.dot(p.astype(kv.dtype), vh, preferred_element_type=jnp.float32))

    # lane-dense (tq, E) store (single full-block writeback)
    ctx_ref[0] = jnp.concatenate(ctx_parts, axis=-1).astype(ctx_ref.dtype)


def attention(q, kv, mask_i8, *, num_heads, return_att):
    B, S, E = q.shape
    tq = _row_tile(S, _QT_TARGET)
    n_q = pl.cdiv(S, tq)
    kernel = functools.partial(_attn_kernel, num_heads=num_heads)
    in_specs = [
        pl.BlockSpec((1, tq, S), lambda b, i: (b, i, 0)),      # int8 mask tile
        pl.BlockSpec((1, tq, E), lambda b, i: (b, i, 0)),      # Q tile (bf16)
        pl.BlockSpec((1, S, 2 * E), lambda b, i: (b, 0, 0)),   # full K/V, resident over q tiles
    ]
    cp = _compiler_params(("parallel", "parallel"))
    if return_att:
        # NOTE: the (1, H, tq, S) f32 att block is only intended for small
        # debug shapes; Encoding_layer.forward does not return it.
        ctx, att = pl.pallas_call(
            kernel,
            out_shape=(jax.ShapeDtypeStruct((B, S, E), q.dtype),
                       jax.ShapeDtypeStruct((B, num_heads, S, S), jnp.float32)),
            grid=(B, n_q),
            in_specs=in_specs,
            out_specs=(pl.BlockSpec((1, tq, E), lambda b, i: (b, i, 0)),
                       pl.BlockSpec((1, num_heads, tq, S),
                                    lambda b, i: (b, 0, i, 0))),
            compiler_params=cp,
        )(mask_i8, q, kv)
        return ctx, att
    ctx = pl.pallas_call(
        kernel,
        out_shape=jax.ShapeDtypeStruct((B, S, E), q.dtype),
        grid=(B, n_q),
        in_specs=in_specs,
        out_specs=pl.BlockSpec((1, tq, E), lambda b, i: (b, i, 0)),
        compiler_params=cp,
    )(mask_i8, q, kv)
    return ctx, None


def _proj_add_ln_kernel(x_ref, w_ref, b_ref, r_ref, g_ref, be_ref, o_ref, *, eps):
    # LayerNorm(ctx @ Wo + bo + residual)   (bf16 matmul, f32 everything else)
    y = jnp.dot(x_ref[...], w_ref[...], preferred_element_type=jnp.float32)
    y = y + b_ref[...] + r_ref[...]
    mu = jnp.mean(y, axis=-1, keepdims=True)
    var = jnp.mean((y - mu) ** 2, axis=-1, keepdims=True)
    yn = (y - mu) * jax.lax.rsqrt(var + eps)
    o_ref[...] = (yn * g_ref[...] + be_ref[...]).astype(o_ref.dtype)


def proj_add_layer_norm(ctx_bf16, w_bf16, b, res_f32, gamma, beta, *, eps, tile_m):
    M, E = ctx_bf16.shape
    N = w_bf16.shape[1]
    kernel = functools.partial(_proj_add_ln_kernel, eps=eps)
    return pl.pallas_call(
        kernel,
        out_shape=jax.ShapeDtypeStruct((M, N), jnp.float32),
        grid=(pl.cdiv(M, tile_m),),
        in_specs=[
            pl.BlockSpec((tile_m, E), lambda i: (i, 0)),   # ctx (bf16)
            pl.BlockSpec((E, N), lambda i: (0, 0)),        # Wo  (bf16, resident)
            pl.BlockSpec((1, N), lambda i: (0, 0)),
            pl.BlockSpec((tile_m, N), lambda i: (i, 0)),   # residual (f32)
            pl.BlockSpec((1, N), lambda i: (0, 0)),
            pl.BlockSpec((1, N), lambda i: (0, 0)),
        ],
        out_specs=pl.BlockSpec((tile_m, N), lambda i: (i, 0)),
        compiler_params=_compiler_params(("parallel",)),
    )(ctx_bf16, w_bf16, b.reshape(1, N), res_f32,
      gamma.reshape(1, N), beta.reshape(1, N))


def _ffn_kernel(x_ref, w1_ref, b1_ref, w2_ref, b2_ref, g_ref, be_ref, o_ref,
                acc_ref, *, eps):
    # Position_wise_FFN: LayerNorm(Linear2(ReLU(Linear1(x))) + x), d_ff tiled.
    d = pl.program_id(1)

    @pl.when(d == 0)
    def _():
        acc_ref[...] = jnp.zeros_like(acc_ref)

    x = x_ref[...]                                             # f32
    h = jnp.dot(x.astype(jnp.bfloat16), w1_ref[...],
                preferred_element_type=jnp.float32) + b1_ref[...]
    h = jnp.maximum(h, 0.0)
    acc_ref[...] += jnp.dot(h.astype(jnp.bfloat16), w2_ref[...],
                            preferred_element_type=jnp.float32)

    @pl.when(d == pl.num_programs(1) - 1)
    def _():
        y = acc_ref[...] + b2_ref[...] + x_ref[...]
        mu = jnp.mean(y, axis=-1, keepdims=True)
        var = jnp.mean((y - mu) ** 2, axis=-1, keepdims=True)
        yn = (y - mu) * jax.lax.rsqrt(var + eps)
        o_ref[...] = (yn * g_ref[...] + be_ref[...]).astype(o_ref.dtype)


def position_wise_ffn(x, w1_bf16, b1, w2_bf16, b2, gamma, beta, *, eps, tile_m):
    M, E = x.shape
    D = w1_bf16.shape[1]
    td = _col_tile(D, _COL_TARGET)
    kernel = functools.partial(_ffn_kernel, eps=eps)
    return pl.pallas_call(
        kernel,
        out_shape=jax.ShapeDtypeStruct((M, E), x.dtype),
        grid=(pl.cdiv(M, tile_m), pl.cdiv(D, td)),
        in_specs=[
            pl.BlockSpec((tile_m, E), lambda i, d: (i, 0)),
            pl.BlockSpec((E, td), lambda i, d: (0, d)),    # bf16
            pl.BlockSpec((1, td), lambda i, d: (0, d)),
            pl.BlockSpec((td, E), lambda i, d: (d, 0)),    # bf16
            pl.BlockSpec((1, E), lambda i, d: (0, 0)),
            pl.BlockSpec((1, E), lambda i, d: (0, 0)),
            pl.BlockSpec((1, E), lambda i, d: (0, 0)),
        ],
        out_specs=pl.BlockSpec((tile_m, E), lambda i, d: (i, 0)),
        scratch_shapes=[pltpu.VMEM((tile_m, E), jnp.float32)],
        compiler_params=_compiler_params(("parallel", "arbitrary")),
    )(x, w1_bf16, b1.reshape(1, D), w2_bf16, b2.reshape(1, E),
      gamma.reshape(1, E), beta.reshape(1, E))


# --------------------------- Encoding layer glue ---------------------------- #

def init_params(key, emb_size, d_ff, h):
    ks = jax.random.split(key, 12)
    scale = 0.02

    def w(k, shape):
        return scale * jax.random.normal(k, shape, jnp.float32)

    wq = w(ks[0], (emb_size, emb_size))
    wk = w(ks[1], (emb_size, emb_size))
    wv = w(ks[2], (emb_size, emb_size))
    params = {
        # Multi_Head (Q/K/V fused into one (E, 3E) projection)
        "w_qkv": jnp.concatenate([wq, wk, wv], axis=1),
        "b_qkv": 0.02 * jax.random.normal(ks[6], (3 * emb_size,), jnp.float32),
        "wo": w(ks[3], (emb_size, emb_size)),
        "bo": 0.02 * jax.random.normal(ks[7], (emb_size,), jnp.float32),
        "ln1_g": 1.0 + 0.1 * jax.random.normal(ks[8], (emb_size,), jnp.float32),
        "ln1_b": 0.1 * jax.random.normal(ks[9], (emb_size,), jnp.float32),
        # Position_wise_FFN
        "w1": w(ks[4], (emb_size, d_ff)),
        "b1": 0.02 * jax.random.normal(ks[10], (d_ff,), jnp.float32),
        "w2": w(ks[5], (d_ff, emb_size)),
        "b2": 0.02 * jax.random.normal(ks[11], (emb_size,), jnp.float32),
        "ln2_g": jnp.ones((emb_size,), jnp.float32),
        "ln2_b": jnp.zeros((emb_size,), jnp.float32),
        "h": h,
    }
    return params


def encoding_layer(x, src_mask, params, *, return_att=False):
    """
    x: (B, S, E) float32, src_mask: (B, S, S) (0 = masked, nonzero = keep)
    returns: output (B, S, E)   [+ att_score (B, H, S, S) if return_att]
    """
    B, S, E = x.shape
    H = params["h"]
    dk = E // H
    scale = 1.0 / (dk ** 0.5)
    M = B * S
    tm = _row_tile(M, _ROW_TARGET)

    xf = x.reshape(M, E)
    # int8 mask: 4x less DMA / VMEM than a float32 (B, S, S) mask.
    mask_i8 = (src_mask != 0).astype(jnp.int8)

    # bf16 weight copies for the MXU (f32 masters stay in params).
    w_qkv = params["w_qkv"].astype(jnp.bfloat16)
    wo = params["wo"].astype(jnp.bfloat16)
    w1 = params["w1"].astype(jnp.bfloat16)
    w2 = params["w2"].astype(jnp.bfloat16)

    # --- Multi_Head ---
    q, kv = qkv_projection(xf, w_qkv, params["b_qkv"], scale=scale, tile_m=tm)
    q = q.reshape(B, S, E)                                     # free reshapes
    kv = kv.reshape(B, S, 2 * E)

    ctx, att = attention(q, kv, mask_i8, num_heads=H, return_att=return_att)
    ctx = ctx.reshape(M, E)                                    # (M, E) bf16

    attn_out = proj_add_layer_norm(ctx, wo, params["bo"], xf,
                                   params["ln1_g"], params["ln1_b"],
                                   eps=_LN_EPS, tile_m=tm)     # (M, E) f32

    # --- Position_wise_FFN (fused linear -> relu -> linear -> residual -> LN) ---
    out = position_wise_ffn(attn_out, w1, params["b1"], w2, params["b2"],
                            params["ln2_g"], params["ln2_b"],
                            eps=_LN_EPS, tile_m=tm)

    out = out.reshape(B, S, E)
    if return_att:
        return out, att
    return out


# ------------------------------- Reference ---------------------------------- #

def _reference_encoding_layer(x, mask, params):
    """Pure-JAX f32 reference of the same math (for numerical validation)."""
    B, S, E = x.shape
    H = params["h"]
    dk = E // H
    xf = x.reshape(B * S, E)

    qkv = xf @ params["w_qkv"] + params["b_qkv"]
    q, k, v = jnp.split(qkv, 3, axis=-1)

    def split_heads(t):
        return t.reshape(B, S, H, dk).transpose(0, 2, 1, 3)

    q, k, v = split_heads(q), split_heads(k), split_heads(v)
    s = jnp.einsum("bhqd,bhkd->bhqk", q, k) / (dk ** 0.5)
    s = jnp.where(mask[:, None, :, :] == 0, -1e9, s)
    p = jax.nn.softmax(s, axis=-1)
    ctx = jnp.einsum("bhqk,bhkd->bhqd", p, v)
    ctx = ctx.transpose(0, 2, 1, 3).reshape(B * S, E)

    def ln(y, g, b, eps=_LN_EPS):
        mu = y.mean(-1, keepdims=True)
        var = ((y - mu) ** 2).mean(-1, keepdims=True)
        return (y - mu) * jax.lax.rsqrt(var + eps) * g + b

    a = ln(ctx @ params["wo"] + params["bo"] + xf, params["ln1_g"], params["ln1_b"])
    h = jnp.maximum(a @ params["w1"] + params["b1"], 0.0)
    o = ln(h @ params["w2"] + params["b2"] + a, params["ln2_g"], params["ln2_b"])
    return o.reshape(B, S, E), p


if __name__ == "__main__":
    B, S, E, H, D_FF = 2, 8, 32, 4, 64

    key = jax.random.PRNGKey(0)
    k_x, k_p = jax.random.split(key)

    x = jax.random.normal(k_x, (B, S, E), jnp.float32)
    # src_mask: (B, S, S); mask out attention to the last two key positions.
    src_mask = jnp.ones((B, S, S), jnp.float32).at[:, :, -2:].set(0.0)

    params = init_params(k_p, E, D_FF, H)

    # default path (matches Encoding_layer.forward: returns only `output`)
    out = jax.block_until_ready(encoding_layer(x, src_mask, params))
    # att-returning path for the masking check
    out2, att = encoding_layer(x, src_mask, params, return_att=True)
    out2 = jax.block_until_ready(out2)
    att = jax.block_until_ready(att)

    assert out.shape == (B, S, E)
    assert att.shape == (B, H, S, S)
    assert bool(jnp.all(jnp.isfinite(out)))
    assert bool(jnp.allclose(out, out2, atol=1e-5, rtol=1e-5))
    # masked key positions should get ~0 attention probability
    assert float(jnp.max(att[:, :, :, -2:])) < 1e-6

    # bf16 MXU operands (f32 accumulation) vs. the pure-f32 reference
    ref_out, ref_att = _reference_encoding_layer(x, src_mask, params)
    assert bool(jnp.allclose(out, ref_out, atol=3e-2, rtol=3e-2)), (
        float(jnp.max(jnp.abs(out - ref_out))))
    assert bool(jnp.allclose(att, ref_att, atol=3e-2, rtol=3e-2))

    print("KERNEL_OK")
</pallas_src>

<mosaic_0001>
module attributes {stable_mosaic.version = 11 : i64} {
  func.func @_qkv_proj_kernel(%arg0: i32, %arg1: memref<16x32xf32, #tpu.memory_space<vmem>>, %arg2: memref<32x96xbf16, #tpu.memory_space<vmem>>, %arg3: memref<1x96xf32, #tpu.memory_space<vmem>>, %arg4: memref<16x32xbf16, #tpu.memory_space<vmem>>, %arg5: memref<16x64xbf16, #tpu.memory_space<vmem>>) attributes {dimension_semantics = [#tpu.dimension_semantics<parallel>], iteration_bounds = array<i64: 1>, scalar_prefetch = 0 : i64, scratch_operands = 0 : i64, tpu.core_type = #tpu.core_type<tc>, window_params = [{transform_indices = @transform_0, window_bounds = array<i64: 16, 32>}, {pipeline_mode = #tpu.pipeline_mode<synchronous>, transform_indices = @transform_1, window_bounds = array<i64: 32, 96>}, {pipeline_mode = #tpu.pipeline_mode<synchronous>, transform_indices = @transform_2, window_bounds = array<i64: 1, 96>}, {transform_indices = @transform_3, window_bounds = array<i64: 16, 32>}, {transform_indices = @transform_4, window_bounds = array<i64: 16, 64>}]} {
    %c0 = arith.constant 0 : index
    %c0_0 = arith.constant 0 : index
    %0 = vector.load %arg1[%c0, %c0_0] : memref<16x32xf32, #tpu.memory_space<vmem>>, vector<16x32xf32>
    %1 = arith.truncf %0 : vector<16x32xf32> to vector<16x32xbf16>
    %c0_1 = arith.constant 0 : index
    %c0_2 = arith.constant 0 : index
    %2 = vector.load %arg2[%c0_1, %c0_2] : memref<32x96xbf16, #tpu.memory_space<vmem>>, vector<32x96xbf16>
    %cst = arith.constant dense<0.000000e+00> : vector<16x96xf32>
    %3 = tpu.matmul %1, %2, %cst {dimension_numbers = #tpu.dot_dimension_numbers<[1], [0], [0], [1], [0, 0, 1, 1], [], []>} : vector<16x32xbf16>, vector<32x96xbf16>, vector<16x96xf32> -> vector<16x96xf32>
    %c0_3 = arith.constant 0 : index
    %c0_4 = arith.constant 0 : index
    %4 = vector.load %arg3[%c0_3, %c0_4] : memref<1x96xf32, #tpu.memory_space<vmem>>, vector<1x96xf32>
    %5 = vector.broadcast %4 : vector<1x96xf32> to vector<16x96xf32>
    %6 = arith.addf %3, %5 : vector<16x96xf32>
    %7 = vector.extract_strided_slice %6 {offsets = [0, 0], sizes = [16, 32], strides = [1, 1]} : vector<16x96xf32> to vector<16x32xf32>
    %cst_5 = arith.constant 0.353553385 : f32
    %8 = vector.broadcast %cst_5 : f32 to vector<16x32xf32>
    %9 = arith.mulf %7, %8 : vector<16x32xf32>
    %10 = arith.truncf %9 : vector<16x32xf32> to vector<16x32xbf16>
    %c0_6 = arith.constant 0 : index
    %c0_7 = arith.constant 0 : index
    %11 = vector.load %arg4[%c0_6, %c0_7] : memref<16x32xbf16, #tpu.memory_space<vmem>>, vector<16x32xbf16>
    tpu.vector_store %arg4[%c0_6, %c0_7], %10 {strides = array<i32>} : memref<16x32xbf16, #tpu.memory_space<vmem>>, vector<16x32xbf16>,
    %12 = vector.extract_strided_slice %6 {offsets = [0, 32], sizes = [16, 64], strides = [1, 1]} : vector<16x96xf32> to vector<16x64xf32>
    %13 = arith.truncf %12 : vector<16x64xf32> to vector<16x64xbf16>
    %c0_8 = arith.constant 0 : index
    %c0_9 = arith.constant 0 : index
    %14 = vector.load %arg5[%c0_8, %c0_9] : memref<16x64xbf16, #tpu.memory_space<vmem>>, vector<16x64xbf16>
    tpu.vector_store %arg5[%c0_8, %c0_9], %13 {strides = array<i32>} : memref<16x64xbf16, #tpu.memory_space<vmem>>, vector<16x64xbf16>,
    return
  }
  func.func @transform_0(%arg0: i32) -> (i32, i32) {
    %c0_i32 = arith.constant 0 : i32
    %c0_i32_0 = arith.constant 0 : i32
    return %arg0, %c0_i32 : i32, i32
  }
  func.func @transform_1(%arg0: i32) -> (i32, i32) {
    %c0_i32 = arith.constant 0 : i32
    %c0_i32_0 = arith.constant 0 : i32
    %c0_i32_1 = arith.constant 0 : i32
    return %c0_i32, %c0_i32_0 : i32, i32
  }
  func.func @transform_2(%arg0: i32) -> (i32, i32) {
    %c0_i32 = arith.constant 0 : i32
    %c0_i32_0 = arith.constant 0 : i32
    %c0_i32_1 = arith.constant 0 : i32
    return %c0_i32, %c0_i32_0 : i32, i32
  }
  func.func @transform_3(%arg0: i32) -> (i32, i32) {
    %c0_i32 = arith.constant 0 : i32
    %c0_i32_0 = arith.constant 0 : i32
    return %arg0, %c0_i32 : i32, i32
  }
  func.func @transform_4(%arg0: i32) -> (i32, i32) {
    %c0_i32 = arith.constant 0 : i32
    %c0_i32_0 = arith.constant 0 : i32
    return %arg0, %c0_i32 : i32, i32
  }
}

</mosaic_0001>

<bundles_post_ra>
// kernel: tpu_custom_call.1
= control target key start
LH: loop header
LB: loop body
LE: loop exit
PB: predicated region body
PF: predicated region fallthrough
CT: control target
= control target key end

     0   :  { %10 = vsyncpa [#allocation3], 0  ;;  %s408_s0 = inlined_call_operand.hbm [shape: f32[16,32], index: 0, kind: input, shape index: {}]   ;;  %s409_s1 = inlined_call_operand.hbm [shape: bf16[32,96], index: 1, kind: input, shape index: {}]   ;;  %s410_s2 = inlined_call_operand.vmem [shape: f32[1,96], index: 2, kind: input, shape index: {}]   ;;  %s411_s3 = inlined_call_operand.hbm [shape: bf16[16,32], index: 3, kind: output, shape index: {0}]   ;;  %s412_s4 = inlined_call_operand.hbm [shape: bf16[16,64], index: 4, kind: output, shape index: {1}]  }
   0x1   :  { %11 = vsyncpa [#allocation6], 0 }
   0x2   :  { %12 = vsyncpa [#allocation4], 0 }
   0x3   :  { %13 = vsyncpa [#allocation9], 0  ;;  %s312_s15 = smov [#allocation2]   ;;  %s216_s19 = scalar_lea.hbm %s408_s0, 256 }
   0x4   :  { %s19_s16 = sshll.u32 %s312_s15, 4  ;;  %p217_p0 = scmp.ne.s32.totalorder %s408_s0, %s216_s19  ;;  %s20_s16 = int_to_ptr.vmem [resolvable:$true] %s19_s16 }
   0x5   :  { %p220_p1 = scmp.lt.u32.totalorder %s216_s19, %s408_s0 }
   0x7   :  { %p222_p2 = pnand %p220_p1, %p217_p0 }
   0x9   :  { %225 = shalt.err (!%p222_p2)
}
   0xa   :  { %s226_s24 = scalar_lea.vmem %s20_s16, 256  ;;  %p231_p4 = scmp.lt.s32.totalorder %s20_s16, %s20_s16 }
   0xb   :  { %p227_p3 = scmp.ne.s32.totalorder %s20_s16, %s226_s24  ;;  %p232_p5 = scmp.lt.s32.totalorder %s226_s24, %s226_s24 }
   0xd   :  { %p233_p6 = por %p232_p5, %p231_p4 }
   0xf   :  { %p234_p7 = pnand %p233_p6, %p227_p3 }
  0x11   :  { %237 = shalt.err (!%p234_p7)
}
  0x12   :  { %s313_s25 = smov 128   ;;  %s314_s26 = smov 8  }
  0x13   :  { %25 = dma.hbm_to_vmem [thread:$0]  %s408_s0, 256, %s20_s16, [#allocation3], %s313_s25, %s313_s25, %s314_s26  }
  0x14   :  { %s315_s29 = smov [#allocation5]   ;;  %s238_s7 = scalar_lea.hbm %s409_s1, 256 }
  0x15   :  { %s31_s30 = sshll.u32 %s315_s29, 4  ;;  %p239_p8 = scmp.ne.s32.totalorder %s409_s1, %s238_s7  ;;  %s32_s30 = int_to_ptr.vmem [resolvable:$true] %s31_s30 }
  0x16   :  { %p242_p9 = scmp.lt.u32.totalorder %s238_s7, %s409_s1 }
  0x18   :  { %p244_p10 = pnand %p242_p9, %p239_p8 }
  0x1a   :  { %247 = shalt.err (!%p244_p10)
}
  0x1b   :  { %s248_s12 = scalar_lea.vmem %s32_s30, 256  ;;  %p253_p12 = scmp.lt.s32.totalorder %s32_s30, %s32_s30 }
  0x1c   :  { %p249_p11 = scmp.ne.s32.totalorder %s32_s30, %s248_s12  ;;  %p254_p13 = scmp.lt.s32.totalorder %s248_s12, %s248_s12 }
  0x1e   :  { %p255_p0 = por %p254_p13, %p253_p12 }
  0x20   :  { %p256_p1 = pnand %p255_p0, %p249_p11 }
  0x22   :  { %259 = shalt.err (!%p256_p1)
}
  0x23   :  { %s316_s0 = smov 64   ;;  %s317_s13 = smov 4  }
  0x24   :  { %37 = dma.hbm_to_vmem [thread:$0]  %s409_s1, 256, %s32_s30, [#allocation6], %s316_s0, %s316_s0, %s317_s13  }
  0x25   :  { %304 = dma.done.wait [#allocation3], 256  }
  0x26   :  { %305 = vsyncadd [#allocation3], 4294967040 }
  0x27   :  { %306 = dma.done.wait [#allocation6], 256  }
  0x28   :  { %307 = vsyncadd [#allocation6], 4294967040  ;;  %v318_v0 = vmov 0.0   ;;  %vm319_vm0 = vmmov 0   ;;  %v214_v1 = vld [vmem:[#allocation5] sm:$0xff]   ;;  %v215_v2 = vld [vmem:[#allocation5 + $0x8] sm:$0xff]  }
  0x29   :  { %195 = vmatprep.subr.bf16.mxu0 %v318_v0  ;;  %199 = vmatprep.mubr.msk.bf16.mxu0 %vm319_vm0, %v318_v0  ;;  %v47_v3 = vld [vmem:[#allocation2] sm:$0xff]  ;;  %v48_v4 = vld [vmem:[#allocation2 + $0x8] sm:$0xff]  ;;  %vm73_vm1 = vcmask 261120   ;;  %vm128_vm2 = vcmask 257024   ;;  %s320_s17 = smov [#allocation7]   ;;  %s321_s19 = smov 96  }
  0x2a   :  { %196 = vmatpush3.bf16.msra.mxu0 %v214_v1  ;;  %v49_v5 = vpack.c.bf16 %v48_v4, %v47_v3  ;;  %v180_v6 = vld [vmem:[%s410_s2] ss:$0 sm:$0xff]  ;;  %s151_s18 = sshll.u32 %s320_s17, 4  ;;  %s152_s18 = int_to_ptr.vmem [resolvable:$true] %s151_s18 }
  0x2b   :  { %197 = vmatprep.subr.bf16.mxu0 %v318_v0  ;;  %s260_s2 = scalar_lea.vmem %s152_s18, 128  ;;  %p265_p3 = scmp.lt.s32.totalorder %s152_s18, %s152_s18 }
  0x2c   :  { %p261_p2 = scmp.ne.s32.totalorder %s152_s18, %s260_s2  ;;  %p266_p4 = scmp.lt.s32.totalorder %s260_s2, %s260_s2 }
  0x2e   :  { %198 = vmatpush3.bf16.msra.mxu0 %v215_v2  ;;  %p267_p5 = por %p266_p4, %p265_p3 }
  0x30   :  { %p268_p6 = pnand %p267_p5, %p261_p2 }
  0x31   :  { %200 = vmatmul.mubr.msk.bf16.vlgmr.msra.gmra.mrb[0].mxu0 %vm73_vm1, %v49_v5 }
 0x104   :  { %v111_v7 = vpop.f32.mrb[0].mxu0 }
 0x105   :  { %v112_v8 = vadd.f32 %v180_v6, %v111_v7  ;;  %v201_v9 = vpop.f32.mrb[1].mxu0 }
 0x106   :  { %v114_v10 = vpop.f32.mrb[2].mxu0 }
 0x107   :  { %v118_v11 = vmul.f32 0.35355338, %v112_v8  ;;  %v115_v12 = vadd.f32 %v180_v6, %v114_v10  ;;  %v202_v13 = vpop.f32.mrb[3].mxu0  ;;  %v190_v14 = vpack.c.bf16 %v112_v8, %v112_v8 }
 0x109   :  { %v188_v15 = vpack.c.bf16 %v118_v11, %v118_v11  ;;  %v119_v16 = vmul.f32 0.35355338, %v115_v12  ;;  %137 = vrot.lane.b32.xlu0 %v190_v14, %s321_s19  ;;  %v191_v18 = vpack.c.bf16 %v115_v12, %v115_v12 }
 0x10b   :  { %v189_v17 = vpack.c.bf16 %v119_v16, %v119_v16  ;;  %129 = vst.msk [vmem:[#allocation7] sm:$0xf] %vm128_vm2, %v188_v15 }
 0x10d   :  { %139 = vrot.lane.b32.xlu0 %v191_v18, %s321_s19  ;;  %130 = vst.msk [vmem:[#allocation7 + $0x4] sm:$0xf] %vm128_vm2, %v189_v17 }
 0x10e   :  { %271 = shalt.err (!%p268_p6)
}
 0x10f   :  { %s272_s22 = scalar_lea.hbm %s411_s3, 128 }
 0x110   :  { %p273_p7 = scmp.ne.s32.totalorder %s411_s3, %s272_s22  ;;  %p276_p8 = scmp.lt.u32.totalorder %s272_s22, %s411_s3 }
 0x112   :  { %p278_p9 = pnand %p276_p8, %p273_p7 }
 0x114   :  { %281 = shalt.err (!%p278_p9)
}
 0x115   :  { %157 = dma.vmem_to_hbm [thread:$0]  %s152_s18, 128, %s411_s3, [#allocation4], %s316_s0, %s316_s0, %s317_s13   ;;  %vm143_vm3 = vcmask 519168  }
 0x116   :  { %s322_s29 = smov [#allocation8]  }
 0x117   :  { %s163_s30 = sshll.u32 %s322_s29, 4  ;;  %s164_s30 = int_to_ptr.vmem [resolvable:$true] %s163_s30 }
 0x118   :  { %s282_s5 = scalar_lea.vmem %s164_s30, 128  ;;  %p287_p11 = scmp.lt.s32.totalorder %s164_s30, %s164_s30 }
 0x119   :  { %p283_p10 = scmp.ne.s32.totalorder %s164_s30, %s282_s5  ;;  %p288_p12 = scmp.lt.s32.totalorder %s282_s5, %s282_s5 }
 0x11b   :  { %p289_p13 = por %p288_p12, %p287_p11 }
 0x11d   :  { %p290_p0 = pnand %p289_p13, %p283_p10 }
 0x17b   :  { %v138_v19 = vpop.permute.xlu0 %137 }
 0x17c   :  { %144 = vst.msk [vmem:[#allocation8] sm:$0xf] %vm143_vm3, %v138_v19 }
 0x17f   :  { %v140_v20 = vpop.permute.xlu0 %139 }
 0x180   :  { %145 = vst.msk [vmem:[#allocation8 + $0x4] sm:$0xf] %vm143_vm3, %v140_v20 }
 0x181   :  { %293 = shalt.err (!%p290_p0)
}
 0x182   :  { %s294_s8 = scalar_lea.hbm %s412_s4, 128 }
 0x183   :  { %p295_p1 = scmp.ne.s32.totalorder %s412_s4, %s294_s8  ;;  %p298_p2 = scmp.lt.u32.totalorder %s294_s8, %s412_s4 }
 0x185   :  { %p300_p3 = pnand %p298_p2, %p295_p1 }
 0x187   :  { %303 = shalt.err (!%p300_p3)
}
 0x188   :  { %169 = dma.vmem_to_hbm [thread:$0]  %s164_s30, 128, %s412_s4, [#allocation9], %s316_s0, %s316_s0, %s317_s13  }
 0x189   :  { %308 = dma.done.wait [#allocation4], 128  }
 0x18a   :  { %309 = vsyncadd [#allocation4], 4294967168 }
 0x18b   :  { %310 = dma.done.wait [#allocation9], 128  }
 0x18c   :  { %311 = vsyncadd [#allocation9], 4294967168 }
 0x18d   :  { %176 = vsyncpa [#allocation3], 1 }
 0x18e   :  { %177 = vsyncpa [#allocation6], 1 }
 0x18f   :  { %178 = vsyncpa [#allocation4], 1 }
 0x190   :  { %179 = vsyncpa [#allocation9], 1 }

</bundles_post_ra>
